<compile_context>
chip_gen: v7x
topology: tpu7x:2x2x1
jax: 0.10.0
libtpu: 0.0.40
codegen_flags: <defaults>
</compile_context>

<pallas_src>
import jax
import jax.numpy as jnp
from jax.experimental import pallas as pl
from jax.experimental.pallas import tpu as pltpu

IN_F, H1, H2, OUT_F = 80, 60, 60, 40


def rho_kernel(x_ref, w1_ref, b1_ref, w2_ref, b2_ref, w3_ref, b3_ref, o_ref):
    # x arrives in f32 (lean HBM stream); cast to the weight dtype on the VPU
    # (huge slack there) right before feeding the MXU.
    x = x_ref[...].astype(w1_ref.dtype)
    # fc1 + ReLU (bf16 operands, f32 accumulation on the MXU)
    h = jnp.dot(x, w1_ref[...], preferred_element_type=jnp.float32)
    h = jnp.maximum(h + b1_ref[...], 0.0)
    # fc2 + ReLU
    h = jnp.dot(h.astype(w2_ref.dtype), w2_ref[...],
                preferred_element_type=jnp.float32)
    h = jnp.maximum(h + b2_ref[...], 0.0)
    # fc3 (no activation)
    h = jnp.dot(h.astype(w3_ref.dtype), w3_ref[...],
                preferred_element_type=jnp.float32)
    o_ref[...] = (h + b3_ref[...]).astype(o_ref.dtype)
    # TODO(synk): if profiling on v5e shows the single vst slot binding on the
    # 40-lane masked store, present a lane-dense (tb//16, 640) output slab.


def prepare_params(params, compute_dtype=jnp.bfloat16):
    """One-time cast of weights to the MXU compute dtype; biases stay f32."""
    return {
        "w1": params["w1"].astype(compute_dtype), "b1": params["b1"],
        "w2": params["w2"].astype(compute_dtype), "b2": params["b2"],
        "w3": params["w3"].astype(compute_dtype), "b3": params["b3"],
    }


def rho_forward(x, kparams, *, block_rows=8192, out_dtype=jnp.float32):
    """x: (B, 80) float32.  kparams: prepare_params() output (w in (in,out) layout)."""
    B = x.shape[0]
    if B <= block_rows:
        tb = B                      # single full-extent block; no alignment constraint
    else:
        tb = (block_rows // 16) * 16  # multiple of 16 rows (bf16 sublane packing)
        assert tb >= 16

    grid = (pl.cdiv(B, tb),)        # ragged last block: OOB rows dropped, no padding pass

    def resident(shape):
        # Full-array block, constant index_map: DMA'd once, stays in VMEM.
        return pl.BlockSpec(shape, lambda i: (0, 0))

    flops = 2 * B * (IN_F * H1 + H1 * H2 + H2 * OUT_F)
    bytes_accessed = (
        B * IN_F * x.dtype.itemsize                      # x read
        + B * OUT_F * jnp.dtype(out_dtype).itemsize      # out write
        + (IN_F * H1 + H1 * H2 + H2 * OUT_F) * 2         # bf16 weights
        + (H1 + H2 + OUT_F) * 4                          # f32 biases
    )

    out = pl.pallas_call(
        rho_kernel,
        out_shape=jax.ShapeDtypeStruct((B, OUT_F), out_dtype),
        grid=grid,
        in_specs=[
            pl.BlockSpec((tb, IN_F), lambda i: (i, 0)),   # x: tiled over batch (f32)
            resident((IN_F, H1)), resident((1, H1)),      # w1, b1
            resident((H1, H2)), resident((1, H2)),        # w2, b2
            resident((H2, OUT_F)), resident((1, OUT_F)),  # w3, b3
        ],
        out_specs=pl.BlockSpec((tb, OUT_F), lambda i: (i, 0)),
        compiler_params=pltpu.CompilerParams(
            dimension_semantics=("parallel",),            # v7x: shard batch over 2 TCs
        ),
        cost_estimate=pl.CostEstimate(
            flops=flops, transcendentals=0, bytes_accessed=bytes_accessed),
    )(x, kparams["w1"], kparams["b1"], kparams["w2"], kparams["b2"],
      kparams["w3"], kparams["b3"])
    return out


def init_params(key):
    """Deterministic init matching nn.Linear shapes (uniform +-1/sqrt(fan_in))."""
    def linear(key, fan_in, fan_out):
        kw, kb = jax.random.split(key)
        bound = 1.0 / jnp.sqrt(fan_in)
        # store weight as (in, out) = transpose of PyTorch's (out, in)
        w = jax.random.uniform(kw, (fan_in, fan_out), jnp.float32, -bound, bound)
        b = jax.random.uniform(kb, (1, fan_out), jnp.float32, -bound, bound)
        return w, b

    k1, k2, k3 = jax.random.split(key, 3)
    w1, b1 = linear(k1, IN_F, H1)
    w2, b2 = linear(k2, H1, H2)
    w3, b3 = linear(k3, H2, OUT_F)
    return {"w1": w1, "b1": b1, "w2": w2, "b2": b2, "w3": w3, "b3": b3}


def rho_reference(x, p):
    h = jnp.maximum(x @ p["w1"] + p["b1"], 0.0)
    h = jnp.maximum(h @ p["w2"] + p["b2"], 0.0)
    return h @ p["w3"] + p["b3"]


if __name__ == "__main__":
    key = jax.random.PRNGKey(0)
    kx, kp, kx2 = jax.random.split(key, 3)
    params = init_params(kp)
    kparams = prepare_params(params)          # one-time bf16 weight cast

    # Small batch: single full-extent block.
    B = 8
    x = jax.random.normal(kx, (B, IN_F), jnp.float32)
    out = jax.block_until_ready(rho_forward(x, kparams))
    ref = rho_reference(x, params)            # f32 reference (PyTorch-equivalent math)
    assert out.shape == (B, OUT_F), out.shape
    # bf16 operands with f32 accumulation: loosened tolerance vs. the f32 reference.
    assert jnp.allclose(out, ref, atol=2e-2, rtol=2e-2), "mismatch vs reference (small)"

    # Non-divisible batch with a small forced tile: exercises the ragged last
    # block (no explicit padding anywhere in the wrapper).
    B2 = 100
    x2 = jax.random.normal(kx2, (B2, IN_F), jnp.float32)
    out2 = jax.block_until_ready(rho_forward(x2, kparams, block_rows=64))
    ref2 = rho_reference(x2, params)
    assert out2.shape == (B2, OUT_F), out2.shape
    assert jnp.allclose(out2, ref2, atol=2e-2, rtol=2e-2), "mismatch vs reference (ragged)"

    print("KERNEL_OK")
</pallas_src>

<mosaic_0001>
module attributes {stable_mosaic.version = 11 : i64} {
  func.func @rho_kernel(%arg0: i32, %arg1: memref<8x80xf32, #tpu.memory_space<vmem>>, %arg2: memref<80x60xbf16, #tpu.memory_space<vmem>>, %arg3: memref<1x60xf32, #tpu.memory_space<vmem>>, %arg4: memref<60x60xbf16, #tpu.memory_space<vmem>>, %arg5: memref<1x60xf32, #tpu.memory_space<vmem>>, %arg6: memref<60x40xbf16, #tpu.memory_space<vmem>>, %arg7: memref<1x40xf32, #tpu.memory_space<vmem>>, %arg8: memref<8x40xf32, #tpu.memory_space<vmem>>) attributes {dimension_semantics = [#tpu.dimension_semantics<parallel>], iteration_bounds = array<i64: 1>, scalar_prefetch = 0 : i64, scratch_operands = 0 : i64, tpu.core_type = #tpu.core_type<tc>, window_params = [{transform_indices = @transform_0, window_bounds = array<i64: 8, 80>}, {pipeline_mode = #tpu.pipeline_mode<synchronous>, transform_indices = @transform_1, window_bounds = array<i64: 80, 60>}, {pipeline_mode = #tpu.pipeline_mode<synchronous>, transform_indices = @transform_2, window_bounds = array<i64: 1, 60>}, {pipeline_mode = #tpu.pipeline_mode<synchronous>, transform_indices = @transform_3, window_bounds = array<i64: 60, 60>}, {pipeline_mode = #tpu.pipeline_mode<synchronous>, transform_indices = @transform_4, window_bounds = array<i64: 1, 60>}, {pipeline_mode = #tpu.pipeline_mode<synchronous>, transform_indices = @transform_5, window_bounds = array<i64: 60, 40>}, {pipeline_mode = #tpu.pipeline_mode<synchronous>, transform_indices = @transform_6, window_bounds = array<i64: 1, 40>}, {transform_indices = @transform_7, window_bounds = array<i64: 8, 40>}]} {
    %c0 = arith.constant 0 : index
    %c0_0 = arith.constant 0 : index
    %0 = vector.load %arg1[%c0, %c0_0] : memref<8x80xf32, #tpu.memory_space<vmem>>, vector<8x80xf32>
    %1 = arith.truncf %0 : vector<8x80xf32> to vector<8x80xbf16>
    %c0_1 = arith.constant 0 : index
    %c0_2 = arith.constant 0 : index
    %2 = vector.load %arg2[%c0_1, %c0_2] : memref<80x60xbf16, #tpu.memory_space<vmem>>, vector<80x60xbf16>
    %cst = arith.constant dense<0.000000e+00> : vector<8x60xf32>
    %3 = tpu.matmul %1, %2, %cst {dimension_numbers = #tpu.dot_dimension_numbers<[1], [0], [0], [1], [0, 0, 1, 1], [], []>} : vector<8x80xbf16>, vector<80x60xbf16>, vector<8x60xf32> -> vector<8x60xf32>
    %c0_3 = arith.constant 0 : index
    %c0_4 = arith.constant 0 : index
    %4 = vector.load %arg3[%c0_3, %c0_4] : memref<1x60xf32, #tpu.memory_space<vmem>>, vector<1x60xf32>
    %5 = vector.broadcast %4 : vector<1x60xf32> to vector<8x60xf32>
    %6 = arith.addf %3, %5 : vector<8x60xf32>
    %cst_5 = arith.constant 0.000000e+00 : f32
    %7 = vector.broadcast %cst_5 : f32 to vector<8x60xf32>
    %8 = arith.maximumf %6, %7 : vector<8x60xf32>
    %9 = arith.truncf %8 : vector<8x60xf32> to vector<8x60xbf16>
    %c0_6 = arith.constant 0 : index
    %c0_7 = arith.constant 0 : index
    %10 = vector.load %arg4[%c0_6, %c0_7] : memref<60x60xbf16, #tpu.memory_space<vmem>>, vector<60x60xbf16>
    %cst_8 = arith.constant dense<0.000000e+00> : vector<8x60xf32>
    %11 = tpu.matmul %9, %10, %cst_8 {dimension_numbers = #tpu.dot_dimension_numbers<[1], [0], [0], [1], [0, 0, 1, 1], [], []>} : vector<8x60xbf16>, vector<60x60xbf16>, vector<8x60xf32> -> vector<8x60xf32>
    %c0_9 = arith.constant 0 : index
    %c0_10 = arith.constant 0 : index
    %12 = vector.load %arg5[%c0_9, %c0_10] : memref<1x60xf32, #tpu.memory_space<vmem>>, vector<1x60xf32>
    %13 = vector.broadcast %12 : vector<1x60xf32> to vector<8x60xf32>
    %14 = arith.addf %11, %13 : vector<8x60xf32>
    %cst_11 = arith.constant 0.000000e+00 : f32
    %15 = vector.broadcast %cst_11 : f32 to vector<8x60xf32>
    %16 = arith.maximumf %14, %15 : vector<8x60xf32>
    %17 = arith.truncf %16 : vector<8x60xf32> to vector<8x60xbf16>
    %c0_12 = arith.constant 0 : index
    %c0_13 = arith.constant 0 : index
    %18 = vector.load %arg6[%c0_12, %c0_13] : memref<60x40xbf16, #tpu.memory_space<vmem>>, vector<60x40xbf16>
    %cst_14 = arith.constant dense<0.000000e+00> : vector<8x40xf32>
    %19 = tpu.matmul %17, %18, %cst_14 {dimension_numbers = #tpu.dot_dimension_numbers<[1], [0], [0], [1], [0, 0, 1, 1], [], []>} : vector<8x60xbf16>, vector<60x40xbf16>, vector<8x40xf32> -> vector<8x40xf32>
    %c0_15 = arith.constant 0 : index
    %c0_16 = arith.constant 0 : index
    %20 = vector.load %arg7[%c0_15, %c0_16] : memref<1x40xf32, #tpu.memory_space<vmem>>, vector<1x40xf32>
    %21 = vector.broadcast %20 : vector<1x40xf32> to vector<8x40xf32>
    %22 = arith.addf %19, %21 : vector<8x40xf32>
    %c0_17 = arith.constant 0 : index
    %c0_18 = arith.constant 0 : index
    %23 = vector.load %arg8[%c0_17, %c0_18] : memref<8x40xf32, #tpu.memory_space<vmem>>, vector<8x40xf32>
    tpu.vector_store %arg8[%c0_17, %c0_18], %22 {strides = array<i32>} : memref<8x40xf32, #tpu.memory_space<vmem>>, vector<8x40xf32>,
    return
  }
  func.func @transform_0(%arg0: i32) -> (i32, i32) {
    %c0_i32 = arith.constant 0 : i32
    %c0_i32_0 = arith.constant 0 : i32
    return %arg0, %c0_i32 : i32, i32
  }
  func.func @transform_1(%arg0: i32) -> (i32, i32) {
    %c0_i32 = arith.constant 0 : i32
    %c0_i32_0 = arith.constant 0 : i32
    %c0_i32_1 = arith.constant 0 : i32
    return %c0_i32, %c0_i32_0 : i32, i32
  }
  func.func @transform_2(%arg0: i32) -> (i32, i32) {
    %c0_i32 = arith.constant 0 : i32
    %c0_i32_0 = arith.constant 0 : i32
    %c0_i32_1 = arith.constant 0 : i32
    return %c0_i32, %c0_i32_0 : i32, i32
  }
  func.func @transform_3(%arg0: i32) -> (i32, i32) {
    %c0_i32 = arith.constant 0 : i32
    %c0_i32_0 = arith.constant 0 : i32
    %c0_i32_1 = arith.constant 0 : i32
    return %c0_i32, %c0_i32_0 : i32, i32
  }
  func.func @transform_4(%arg0: i32) -> (i32, i32) {
    %c0_i32 = arith.constant 0 : i32
    %c0_i32_0 = arith.constant 0 : i32
    %c0_i32_1 = arith.constant 0 : i32
    return %c0_i32, %c0_i32_0 : i32, i32
  }
  func.func @transform_5(%arg0: i32) -> (i32, i32) {
    %c0_i32 = arith.constant 0 : i32
    %c0_i32_0 = arith.constant 0 : i32
    %c0_i32_1 = arith.constant 0 : i32
    return %c0_i32, %c0_i32_0 : i32, i32
  }
  func.func @transform_6(%arg0: i32) -> (i32, i32) {
    %c0_i32 = arith.constant 0 : i32
    %c0_i32_0 = arith.constant 0 : i32
    %c0_i32_1 = arith.constant 0 : i32
    return %c0_i32, %c0_i32_0 : i32, i32
  }
  func.func @transform_7(%arg0: i32) -> (i32, i32) {
    %c0_i32 = arith.constant 0 : i32
    %c0_i32_0 = arith.constant 0 : i32
    return %arg0, %c0_i32 : i32, i32
  }
}

</mosaic_0001>

<bundles_post_ra>
// kernel: tpu_custom_call.1
= control target key start
LH: loop header
LB: loop body
LE: loop exit
PB: predicated region body
PF: predicated region fallthrough
CT: control target
= control target key end

     0   :  { %v424_v1 = vmov 0.0   ;;  %vm425_vm0 = vmmov 0   ;;  %s537_s0 = inlined_call_operand.vmem [shape: f32[8,80], index: 0, kind: input, shape index: {}]   ;;  %s538_s1 = inlined_call_operand.vmem [shape: bf16[80,60], index: 1, kind: input, shape index: {}]   ;;  %s539_s2 = inlined_call_operand.vmem [shape: f32[1,60], index: 2, kind: input, shape index: {}]   ;;  %s540_s3 = inlined_call_operand.vmem [shape: bf16[60,60], index: 3, kind: input, shape index: {}]   ;;  %s541_s4 = inlined_call_operand.vmem [shape: f32[1,60], index: 4, kind: input, shape index: {}]   ;;  %s542_s5 = inlined_call_operand.vmem [shape: bf16[60,40], index: 5, kind: input, shape index: {}]   ;;  %s543_s6 = inlined_call_operand.vmem [shape: f32[1,40], index: 6, kind: input, shape index: {}]   ;;  %s544_s7 = inlined_call_operand.hbm [shape: f32[8,40], index: 7, kind: output, shape index: {}]  }
   0x1   :  { %v387_v0 = vld [vmem:[%s538_s1] sm:$0xff]   ;;  %346 = vmatprep.subr.bf16.mxu0 %v424_v1  ;;  %360 = vmatprep.subr.bf16.mxu1 %v424_v1  ;;  %v388_v2 = vld [vmem:[%s538_s1 + $0x8] sm:$0xff]   ;;  %v389_v3 = vld [vmem:[%s538_s1 + $0x10] sm:$0xff]  }
   0x2   :  { %347 = vmatpush3.bf16.msra.mxu0 %v387_v0  ;;  %356 = vmatprep.mubr.msk.bf16.mxu0 %vm425_vm0, %v424_v1  ;;  %v392_v4 = vld [vmem:[%s540_s3] sm:$0xff]   ;;  %v393_v5 = vld [vmem:[%s540_s3 + $0x8] sm:$0xff]   ;;  %v390_v6 = vld [vmem:[%s538_s1 + $0x18] sm:$0xff]  }
   0x3   :  { %348 = vmatprep.subr.bf16.mxu0 %v424_v1  ;;  %368 = vmatprep.mubr.msk.bf16.mxu1 %vm425_vm0, %v424_v1 }
   0x4   :  { %361 = vmatpush3.bf16.msra.mxu1 %v392_v4 }
   0x5   :  { %362 = vmatprep.subr.bf16.mxu1 %v424_v1 }
   0x6   :  { %349 = vmatpush3.bf16.msra.mxu0 %v388_v2 }
   0x7   :  { %350 = vmatprep.subr.bf16.mxu0 %v424_v1 }
   0xa   :  { %351 = vmatpush3.bf16.msra.mxu0 %v389_v3 }
   0xb   :  { %352 = vmatprep.subr.bf16.mxu0 %v424_v1 }
   0xc   :  { %12 = vsyncpa [#allocation3], 0  ;;  %363 = vmatpush3.bf16.msra.mxu1 %v393_v5  ;;  %v391_v7 = vld [vmem:[%s538_s1 + $0x20] sm:$0xff]   ;;  %vm77_vm1 = vcmask 654336   ;;  %v394_v10 = vld [vmem:[%s540_s3 + $0x10] sm:$0xff]   ;;  %vm165_vm2 = vcmask 1045504  }
   0xd   :  { %364 = vmatprep.subr.bf16.mxu1 %v424_v1  ;;  %v28_v8 = vld [vmem:[%s537_s0] sm:$0xff]  ;;  %v395_v11 = vld [vmem:[%s540_s3 + $0x18] sm:$0x3f]   ;;  %vm161_vm3 = vcmask 490496   ;;  %v397_v22 = vld [vmem:[%s542_s5 + $0x8] sm:$0xff]   ;;  %vm295_vm4 = vcmask 326656  }
   0xe   :  { %353 = vmatpush3.bf16.msra.mxu0 %v390_v6  ;;  %v29_v9 = vpack.c.bf16 %v28_v8, %v28_v8  ;;  %v167_v12 = vsel %vm165_vm2, %v395_v11, 0  ;;  %v311_v13 = vld [vmem:[%s539_s2] ss:$0 sm:$0xff]  ;;  %v398_v23 = vld [vmem:[%s542_s5 + $0x10] sm:$0xff]   ;;  %v399_v24 = vld [vmem:[%s542_s5 + $0x18] sm:$0x3f]  }
   0xf   :  { %354 = vmatprep.subr.bf16.mxu0 %v424_v1  ;;  %v396_v20 = vld [vmem:[%s542_s5] sm:$0xff]   ;;  %v253_v25 = vsel %vm165_vm2, %v399_v24, 0  ;;  %s426_s5 = smov [#allocation2]  }
  0x10   :  { %365 = vmatpush3.bf16.msra.mxu1 %v394_v10  ;;  %v318_v26 = vld [vmem:[%s541_s4] ss:$0 sm:$0xff]  ;;  %s303_s8 = sshll.u32 %s426_s5, 4  ;;  %s304_s8 = int_to_ptr.vmem [resolvable:$true] %s303_s8 }
  0x11   :  { %366 = vmatprep.subr.bf16.mxu1 %v424_v1  ;;  %v324_v34 = vld [vmem:[%s543_s6] ss:$0 sm:$0xff]  ;;  %s400_s4 = scalar_lea.vmem %s304_s8, 128  ;;  %p405_p1 = scmp.lt.s32.totalorder %s304_s8, %s304_s8 }
  0x12   :  { %355 = vmatpush3.bf16.msra.mxu0 %v391_v7  ;;  %p401_p0 = scmp.ne.s32.totalorder %s304_s8, %s400_s4  ;;  %p406_p2 = scmp.lt.s32.totalorder %s400_s4, %s400_s4 }
  0x14   :  { %367 = vmatpush3.bf16.msra.mxu1 %v167_v12  ;;  %p407_p3 = por %p406_p2, %p405_p1 }
  0x15   :  { %357 = vmatmul.mubr.msk.bf16.vlgmr.msra.gmra.mrb[0].mxu0 %vm77_vm1, %v29_v9  ;;  %372 = vmatprep.subr.bf16.mxu1 %v424_v1 }
  0x16   :  { %p408_p4 = pnand %p407_p3, %p401_p0 }
  0xe8   :  { %v115_v14 = vpop.f32.mrb[0].mxu0 }
  0xe9   :  { %v116_v15 = vadd.f32 %v311_v13, %v115_v14  ;;  %v358_v16 = vpop.f32.mrb[1].mxu0 }
  0xea   :  { %v118_v17 = vpop.f32.mrb[2].mxu0 }
  0xeb   :  { %v121_v18 = vmax.f32 %v116_v15, 0.0  ;;  %v359_v19 = vpop.f32.mrb[3].mxu0 }
  0xed   :  { %v122_v21 = vpack.c.bf16 %v121_v18, %v121_v18 }
  0xef   :  { %369 = vmatmul.mubr.msk.bf16.vlgmr.msra.gmra.mrb[0].mxu1 %vm161_vm3, %v122_v21 }
  0xf0   :  { %373 = vmatpush3.bf16.msra.mxu1 %v396_v20  ;;  %380 = vmatprep.mubr.msk.bf16.mxu1 %vm425_vm0, %v424_v1 }
  0xf1   :  { %374 = vmatprep.subr.bf16.mxu1 %v424_v1 }
  0xf4   :  { %375 = vmatpush3.bf16.msra.mxu1 %v397_v22 }
  0xf5   :  { %376 = vmatprep.subr.bf16.mxu1 %v424_v1 }
  0xf8   :  { %377 = vmatpush3.bf16.msra.mxu1 %v398_v23 }
  0xf9   :  { %378 = vmatprep.subr.bf16.mxu1 %v424_v1 }
  0xfc   :  { %379 = vmatpush3.bf16.msra.mxu1 %v253_v25 }
 0x1c2   :  { %v203_v27 = vpop.f32.mrb[0].mxu1 }
 0x1c3   :  { %v204_v28 = vadd.f32 %v318_v26, %v203_v27  ;;  %v370_v29 = vpop.f32.mrb[1].mxu1 }
 0x1c4   :  { %v206_v30 = vpop.f32.mrb[2].mxu1 }
 0x1c5   :  { %v209_v31 = vmax.f32 %v204_v28, 0.0  ;;  %v371_v32 = vpop.f32.mrb[3].mxu1 }
 0x1c7   :  { %v210_v33 = vpack.c.bf16 %v209_v31, %v209_v31 }
 0x1c9   :  { %381 = vmatmul.mubr.msk.bf16.vlgmr.msra.gmra.mrb[4].mxu1 %vm161_vm3, %v210_v33 }
 0x29c   :  { %v289_v35 = vpop.f32.mrb[4].mxu1 }
 0x29d   :  { %v290_v36 = vadd.f32 %v324_v34, %v289_v35  ;;  %v382_v37 = vpop.f32.mrb[5].mxu1 }
 0x29e   :  { %v292_v38 = vpop.f32.mrb[6].mxu1 }
 0x29f   :  { %v383_v39 = vpop.f32.mrb[7].mxu1  ;;  %296 = vst.msk [vmem:[#allocation2] sm:$0xff] %vm295_vm4, %v290_v36 }
 0x2a0   :  { %411 = shalt.err (!%p408_p4)
}
 0x2a1   :  { %s412_s6 = scalar_lea.hbm %s544_s7, 128 }
 0x2a2   :  { %p413_p5 = scmp.ne.s32.totalorder %s544_s7, %s412_s6  ;;  %p416_p6 = scmp.lt.u32.totalorder %s412_s6, %s544_s7 }
 0x2a4   :  { %p418_p7 = pnand %p416_p6, %p413_p5 }
 0x2a6   :  { %421 = shalt.err (!%p418_p7)
}
 0x2a7   :  { %306 = dma.vmem_to_hbm [thread:$0]  %s304_s8, 128, %s544_s7, [#allocation3]  }
 0x2a8   :  { %422 = dma.done.wait [#allocation3], 128  }
 0x2a9   :  { %423 = vsyncadd [#allocation3], 4294967168 }
 0x2aa   :  { %310 = vsyncpa [#allocation3], 1 }

</bundles_post_ra>
